<compile_context>
chip_gen: v7x
topology: tpu7x:2x2x1
jax: 0.10.0
libtpu: 0.0.40
codegen_flags: <defaults>
</compile_context>

<pallas_src>
import functools

import jax
import jax.numpy as jnp
from jax.experimental import pallas as pl
from jax.experimental.pallas import tpu as pltpu

_MAX_TB = 32768  # lane-axis batch tile cap (keeps f32 intermediates well under VMEM)


def _round_up(x, m):
    return ((x + m - 1) // m) * m


def _pick_batch_tile(B, batch_tile):
    """128-aligned lane tile; big enough to amortize per-step overhead, but with
    >=2 grid steps when B allows so v7x can use both TensorCores."""
    b128 = _round_up(B, 128)
    if batch_tile is not None:
        return max(128, min(_round_up(batch_tile, 128), b128))
    if b128 <= 128:
        return 128
    half = _round_up(b128 // 2, 128)          # >= 2 grid steps
    return min(half, _MAX_TB)


def simplenet_kernel(x_ref, w1_ref, w2_ref, b2_ref, w3_ref, b3_ref, o_ref):
    # fc1 (+ folded bias) + relu : (64,8) @ (8,TB) -> (64,TB)
    h = jnp.dot(w1_ref[...], x_ref[...], preferred_element_type=jnp.float32)
    h = jnp.maximum(h, 0.0)
    # fc2 + relu : (32,64) @ (64,TB) -> (32,TB)
    h = jnp.dot(w2_ref[...], h, preferred_element_type=jnp.float32)
    h = jnp.maximum(h + b2_ref[...], 0.0)
    # fc3 (out_features == 1): VPU broadcast-multiply + sublane reduce instead
    # of an M=1 MXU pass.
    out = jnp.sum(w3_ref[...] * h, axis=0, keepdims=True) + b3_ref[...]
    o_ref[...] = out.astype(o_ref.dtype)      # (1, TB) lane-dense store


@functools.partial(jax.jit, static_argnames=("batch_tile", "fuse_x_transform"))
def simplenet_forward(x, params, *, batch_tile=None, fuse_x_transform=False):
    """x: [B, 5] float32. params: PyTorch-convention (out, in) weights + biases."""
    B, f_in = x.shape
    assert f_in == 5

    tb = _pick_batch_tile(B, batch_tile)
    b_pad = _round_up(B, tb)
    grid = (b_pad // tb,)

    # x -> (8, B_pad): features on sublanes, batch on lanes, ones row for the
    # folded fc1 bias.  Padded batch columns are all-zero (their garbage output
    # is sliced off below).  Under jit this is one fused pad/concat/transpose
    # pass; with fuse_x_transform=True XLA may fuse it into the pallas operand.
    ones_col = jnp.ones((B, 1), x.dtype)
    zeros_col = jnp.zeros((B, 2), x.dtype)
    x8 = jnp.concatenate([x, ones_col, zeros_col], axis=1)       # (B, 8)
    x_t = jnp.pad(x8, ((0, b_pad - B), (0, 0))).T                # (8, B_pad)

    # fc1 weight with b1 folded in as column 5.
    w1e = jnp.concatenate(
        [params["w1"], params["b1"][:, None], jnp.zeros((64, 2), params["w1"].dtype)],
        axis=1)                                                  # (64, 8)
    w2 = params["w2"]                                            # (32, 64)
    b2 = params["b2"].reshape(-1, 1)                             # (32, 1)
    w3 = params["w3"].T                                          # (32, 1)
    b3 = params["b3"].reshape(-1, 1)                             # (1, 1)

    def const(shape):  # VMEM-resident: same block every grid step
        return pl.BlockSpec(shape, lambda i: (0, 0))

    n_inputs = 6
    allow_fusion = ([True] + [False] * (n_inputs - 1)) if fuse_x_transform else None

    out = pl.pallas_call(
        simplenet_kernel,
        out_shape=jax.ShapeDtypeStruct((1, b_pad), jnp.float32),
        grid=grid,
        in_specs=[
            pl.BlockSpec((8, tb), lambda i: (0, i)),  # x tile, batch on lanes
            const((64, 8)),    # w1 (+b1 folded)
            const((32, 64)),   # w2
            const((32, 1)),    # b2
            const((32, 1)),    # w3 (column)
            const((1, 1)),     # b3
        ],
        out_specs=pl.BlockSpec((1, tb), lambda i: (0, i)),
        compiler_params=pltpu.CompilerParams(
            dimension_semantics=("parallel",),   # v7x: shard batch tiles over 2 TCs
            allow_input_fusion=allow_fusion,
        ),
    )(x_t, w1e, w2, b2, w3, b3)

    return out[:, :B].T   # (B, 1)


def init_params(key):
    """Deterministic init mimicking nn.Linear's uniform(-1/sqrt(fan_in), 1/sqrt(fan_in))."""
    ks = jax.random.split(key, 6)

    def lin(kw, kb, fan_in, fan_out):
        bound = 1.0 / jnp.sqrt(fan_in)
        w = jax.random.uniform(kw, (fan_out, fan_in), jnp.float32, -bound, bound)
        b = jax.random.uniform(kb, (fan_out,), jnp.float32, -bound, bound)
        return w, b

    w1, b1 = lin(ks[0], ks[1], 5, 64)
    w2, b2 = lin(ks[2], ks[3], 64, 32)
    w3, b3 = lin(ks[4], ks[5], 32, 1)
    return {"w1": w1, "b1": b1, "w2": w2, "b2": b2, "w3": w3, "b3": b3}


def reference_forward(x, p):
    h = jnp.maximum(x @ p["w1"].T + p["b1"], 0.0)
    h = jnp.maximum(h @ p["w2"].T + p["b2"], 0.0)
    return h @ p["w3"].T + p["b3"]


if __name__ == "__main__":
    key = jax.random.PRNGKey(0)
    kp, kx = jax.random.split(key)
    params = init_params(kp)

    # Small shape consistent with the module: batch=8, in_features=5.
    x = jax.random.normal(kx, (8, 5), jnp.float32)
    out = jax.block_until_ready(simplenet_forward(x, params))
    ref = reference_forward(x, params)
    assert out.shape == (8, 1), out.shape
    assert jnp.allclose(out, ref, atol=1e-5, rtol=1e-5), "mismatch vs reference"

    # Ragged batch, default tile selection (>=2 grid steps path).
    x2 = jax.random.normal(kx, (300, 5), jnp.float32)
    out2 = jax.block_until_ready(simplenet_forward(x2, params))
    ref2 = reference_forward(x2, params)
    assert out2.shape == (300, 1), out2.shape
    assert jnp.allclose(out2, ref2, atol=1e-5, rtol=1e-5), "mismatch vs reference (auto tile)"

    # Explicit (small) tile: exercises the multi-step grid + 128-rounding path.
    out3 = jax.block_until_ready(simplenet_forward(x2, params, batch_tile=128))
    assert out3.shape == (300, 1), out3.shape
    assert jnp.allclose(out3, ref2, atol=1e-5, rtol=1e-5), "mismatch vs reference (tiled)"

    print("KERNEL_OK")
</pallas_src>

<mosaic_0001>
module attributes {stable_mosaic.version = 11 : i64} {
  func.func @simplenet_kernel(%arg0: i32, %arg1: memref<8x128xf32, #tpu.memory_space<vmem>>, %arg2: memref<64x8xf32, #tpu.memory_space<vmem>>, %arg3: memref<32x64xf32, #tpu.memory_space<vmem>>, %arg4: memref<32x1xf32, #tpu.memory_space<vmem>>, %arg5: memref<32x1xf32, #tpu.memory_space<vmem>>, %arg6: memref<1x1xf32, #tpu.memory_space<vmem>>, %arg7: memref<1x128xf32, #tpu.memory_space<vmem>>) attributes {dimension_semantics = [#tpu.dimension_semantics<parallel>], iteration_bounds = array<i64: 1>, scalar_prefetch = 0 : i64, scratch_operands = 0 : i64, tpu.core_type = #tpu.core_type<tc>, window_params = [{transform_indices = @transform_0, window_bounds = array<i64: 8, 128>}, {pipeline_mode = #tpu.pipeline_mode<synchronous>, transform_indices = @transform_1, window_bounds = array<i64: 64, 8>}, {pipeline_mode = #tpu.pipeline_mode<synchronous>, transform_indices = @transform_2, window_bounds = array<i64: 32, 64>}, {pipeline_mode = #tpu.pipeline_mode<synchronous>, transform_indices = @transform_3, window_bounds = array<i64: 32, 1>}, {pipeline_mode = #tpu.pipeline_mode<synchronous>, transform_indices = @transform_4, window_bounds = array<i64: 32, 1>}, {pipeline_mode = #tpu.pipeline_mode<synchronous>, transform_indices = @transform_5, window_bounds = array<i64: 1, 1>}, {transform_indices = @transform_6, window_bounds = array<i64: 1, 128>}]} {
    %c0 = arith.constant 0 : index
    %c0_0 = arith.constant 0 : index
    %0 = vector.load %arg2[%c0, %c0_0] : memref<64x8xf32, #tpu.memory_space<vmem>>, vector<64x8xf32>
    %c0_1 = arith.constant 0 : index
    %c0_2 = arith.constant 0 : index
    %1 = vector.load %arg1[%c0_1, %c0_2] : memref<8x128xf32, #tpu.memory_space<vmem>>, vector<8x128xf32>
    %cst = arith.constant dense<0.000000e+00> : vector<64x128xf32>
    %2 = tpu.matmul %0, %1, %cst {dimension_numbers = #tpu.dot_dimension_numbers<[1], [0], [0], [1], [0, 0, 1, 1], [], []>} : vector<64x8xf32>, vector<8x128xf32>, vector<64x128xf32> -> vector<64x128xf32>
    %cst_3 = arith.constant 0.000000e+00 : f32
    %3 = vector.broadcast %cst_3 : f32 to vector<64x128xf32>
    %4 = arith.maximumf %2, %3 : vector<64x128xf32>
    %c0_4 = arith.constant 0 : index
    %c0_5 = arith.constant 0 : index
    %5 = vector.load %arg3[%c0_4, %c0_5] : memref<32x64xf32, #tpu.memory_space<vmem>>, vector<32x64xf32>
    %cst_6 = arith.constant dense<0.000000e+00> : vector<32x128xf32>
    %6 = tpu.matmul %5, %4, %cst_6 {dimension_numbers = #tpu.dot_dimension_numbers<[1], [0], [0], [1], [0, 0, 1, 1], [], []>} : vector<32x64xf32>, vector<64x128xf32>, vector<32x128xf32> -> vector<32x128xf32>
    %c0_7 = arith.constant 0 : index
    %c0_8 = arith.constant 0 : index
    %7 = vector.load %arg4[%c0_7, %c0_8] : memref<32x1xf32, #tpu.memory_space<vmem>>, vector<32x1xf32>
    %8 = vector.broadcast %7 : vector<32x1xf32> to vector<32x128xf32>
    %9 = arith.addf %6, %8 : vector<32x128xf32>
    %cst_9 = arith.constant 0.000000e+00 : f32
    %10 = vector.broadcast %cst_9 : f32 to vector<32x128xf32>
    %11 = arith.maximumf %9, %10 : vector<32x128xf32>
    %c0_10 = arith.constant 0 : index
    %c0_11 = arith.constant 0 : index
    %12 = vector.load %arg5[%c0_10, %c0_11] : memref<32x1xf32, #tpu.memory_space<vmem>>, vector<32x1xf32>
    %13 = vector.broadcast %12 : vector<32x1xf32> to vector<32x128xf32>
    %14 = arith.mulf %13, %11 : vector<32x128xf32>
    %cst_12 = arith.constant dense<0.000000e+00> : vector<128xf32>
    %15 = vector.multi_reduction <add>, %14, %cst_12 [0] : vector<32x128xf32> to vector<128xf32>
    %16 = vector.shape_cast %15 : vector<128xf32> to vector<1x128xf32>
    %c0_13 = arith.constant 0 : index
    %c0_14 = arith.constant 0 : index
    %17 = vector.load %arg6[%c0_13, %c0_14] : memref<1x1xf32, #tpu.memory_space<vmem>>, vector<1x1xf32>
    %18 = vector.broadcast %17 : vector<1x1xf32> to vector<1x128xf32>
    %19 = arith.addf %16, %18 : vector<1x128xf32>
    %c0_15 = arith.constant 0 : index
    %c0_16 = arith.constant 0 : index
    %20 = vector.load %arg7[%c0_15, %c0_16] : memref<1x128xf32, #tpu.memory_space<vmem>>, vector<1x128xf32>
    tpu.vector_store %arg7[%c0_15, %c0_16], %19 {strides = array<i32>} : memref<1x128xf32, #tpu.memory_space<vmem>>, vector<1x128xf32>,
    return
  }
  func.func @transform_0(%arg0: i32) -> (i32, i32) {
    %c0_i32 = arith.constant 0 : i32
    %c0_i32_0 = arith.constant 0 : i32
    return %c0_i32, %arg0 : i32, i32
  }
  func.func @transform_1(%arg0: i32) -> (i32, i32) {
    %c0_i32 = arith.constant 0 : i32
    %c0_i32_0 = arith.constant 0 : i32
    %c0_i32_1 = arith.constant 0 : i32
    return %c0_i32, %c0_i32_0 : i32, i32
  }
  func.func @transform_2(%arg0: i32) -> (i32, i32) {
    %c0_i32 = arith.constant 0 : i32
    %c0_i32_0 = arith.constant 0 : i32
    %c0_i32_1 = arith.constant 0 : i32
    return %c0_i32, %c0_i32_0 : i32, i32
  }
  func.func @transform_3(%arg0: i32) -> (i32, i32) {
    %c0_i32 = arith.constant 0 : i32
    %c0_i32_0 = arith.constant 0 : i32
    %c0_i32_1 = arith.constant 0 : i32
    return %c0_i32, %c0_i32_0 : i32, i32
  }
  func.func @transform_4(%arg0: i32) -> (i32, i32) {
    %c0_i32 = arith.constant 0 : i32
    %c0_i32_0 = arith.constant 0 : i32
    %c0_i32_1 = arith.constant 0 : i32
    return %c0_i32, %c0_i32_0 : i32, i32
  }
  func.func @transform_5(%arg0: i32) -> (i32, i32) {
    %c0_i32 = arith.constant 0 : i32
    %c0_i32_0 = arith.constant 0 : i32
    %c0_i32_1 = arith.constant 0 : i32
    return %c0_i32, %c0_i32_0 : i32, i32
  }
  func.func @transform_6(%arg0: i32) -> (i32, i32) {
    %c0_i32 = arith.constant 0 : i32
    %c0_i32_0 = arith.constant 0 : i32
    return %c0_i32, %arg0 : i32, i32
  }
}

</mosaic_0001>

<bundles_post_ra>
// kernel: simplenet_forward.1
= control target key start
LH: loop header
LB: loop body
LE: loop exit
PB: predicated region body
PF: predicated region fallthrough
CT: control target
= control target key end

     0   :  { %vm34_vm0 = vcmask 64512   ;;  %vm200_vm1 = vcmask 523264   ;;  %v451_v11 = vmov 0   ;;  %s568_s0 = inlined_call_operand.vmem [shape: f32[8,128], index: 0, kind: input, shape index: {}]   ;;  %s569_s1 = inlined_call_operand.vmem [shape: f32[64,8], index: 1, kind: input, shape index: {}]   ;;  %s570_s2 = inlined_call_operand.vmem [shape: f32[32,64], index: 2, kind: input, shape index: {}]   ;;  %s571_s3 = inlined_call_operand.vmem [shape: f32[32,1], index: 3, kind: input, shape index: {}]   ;;  %s572_s5 = inlined_call_operand.<no memory space> [shape: f32[1,1], index: 5, kind: input, shape index: {}]   ;;  %s573_s4 = inlined_call_operand.vmem [shape: f32[32,1], index: 4, kind: input, shape index: {}]   ;;  %s574_s6 = inlined_call_operand.vmem [shape: f32[1,128], index: 6, kind: output, shape index: {}]  }
   0x1   :  { %v33_v0 = vld [vmem:[%s568_s0] sm:$0xff]  ;;  %v26_v2 = vld [vmem:[%s569_s1 + $0x8] sm:$0xff]  ;;  %v27_v3 = vld [vmem:[%s569_s1 + $0x10] sm:$0xff]  ;;  %449 = vset.pattern.permute.xlu0 %v451_v11  ;;  %450 = vset.pattern.permute.xlu1 %v451_v11  ;;  %v11_v14 = vstv %s572_s5 }
   0x2   :  { %v25_v1 = vld [vmem:[%s569_s1] sm:$0xff]  ;;  %388 = vmatprep.subr.mxu0 %v33_v0  ;;  %v28_v4 = vld [vmem:[%s569_s1 + $0x18] sm:$0xff]  ;;  %v30_v6 = vld [vmem:[%s569_s1 + $0x28] sm:$0xff]  ;;  %12 = vst [vmem:[#allocation2] sm:$0x1] %v11_v14 }
   0x3   :  { %390 = vmatprep.mubr.msk.f32.mxu0 %vm34_vm0, %v25_v1  ;;  %389 = vmatpush3.msra.mxu0 %v33_v0  ;;  %v29_v5 = vld [vmem:[%s569_s1 + $0x20] sm:$0xff]  ;;  %v31_v7 = vld [vmem:[%s569_s1 + $0x30] sm:$0xff]  ;;  %v32_v8 = vld [vmem:[%s569_s1 + $0x38] sm:$0xff] }
   0x4   :  { %391 = vmatmul.mubr.msk.f32.vlgmr.msra.gmra.mrb[0].mxu0 %vm34_vm0, %v26_v2  ;;  %v172_v9 = vld [vmem:[%s570_s2] sm:$0xff]  ;;  %v174_v10 = vld [vmem:[%s570_s2 + $0x10] sm:$0xff]  ;;  %v177_v15 = vld [vmem:[%s571_s3 + $0x8] sm:$0xff] }
   0x5   :  { %393 = vmatprep.mubr.msk.f32.mxu0 %vm34_vm0, %v27_v3  ;;  %421 = vmatprep.mubr.msk.f32.mxu1 %vm200_vm1, %v174_v10  ;;  %v176_v12 = vld [vmem:[%s571_s3] sm:$0xff]  ;;  %v178_v13 = vld [vmem:[%s571_s3 + $0x10] sm:$0xff]  ;;  %v179_v16 = vld [vmem:[%s571_s3 + $0x18] sm:$0xff] }
   0x6   :  { %182 = vperm.xlu0 %449, %v176_v12   ;;  %192 = vperm.xlu1 %450, %v178_v13   ;;  %v302_v17 = vld [vmem:[%s573_s4] sm:$0xff]  ;;  %v303_v18 = vld [vmem:[%s573_s4 + $0x8] sm:$0xff]  ;;  %v304_v19 = vld [vmem:[%s573_s4 + $0x10] sm:$0xff] }
   0x7   :  { %v305_v20 = vld [vmem:[%s573_s4 + $0x18] sm:$0xff]  ;;  %v173_v42 = vld [vmem:[%s570_s2 + $0x8] sm:$0xff] }
   0x8   :  { %394 = vmatmul.mubr.msk.f32.gmra.mrb[2].mxu0 %vm34_vm0, %v28_v4  ;;  %v175_v43 = vld [vmem:[%s570_s2 + $0x18] sm:$0xff] }
   0x9   :  { %396 = vmatprep.mubr.msk.f32.mxu0 %vm34_vm0, %v29_v5  ;;  %v339_v21 = vld [vmem:[#allocation2] sm:$0x1] }
   0xa   :  { %187 = vperm.xlu0 %449, %v177_v15   ;;  %197 = vperm.xlu1 %450, %v179_v16  }
   0xc   :  { %397 = vmatmul.mubr.msk.f32.gmra.mrb[4].mxu0 %vm34_vm0, %v30_v6  ;;  %v345_v6 = vlaneseq }
   0xd   :  { %399 = vmatprep.mubr.msk.f32.mxu0 %vm34_vm0, %v31_v7 }
   0xe   :  { %308 = vperm.xlu0 %449, %v302_v17   ;;  %313 = vperm.xlu1 %450, %v303_v18  }
  0x10   :  { %400 = vmatmul.mubr.msk.f32.gmra.mrb[6].mxu0 %vm34_vm0, %v32_v8 }
  0x11   :  { %418 = vmatprep.mubr.msk.f32.mxu0 %vm200_vm1, %v172_v9  ;;  %v346_v9 = vshrl.u32 %v345_v6, 7 }
  0x12   :  { %318 = vperm.xlu0 %449, %v304_v19   ;;  %323 = vperm.xlu1 %450, %v305_v20  }
  0x13   :  { %v347_v12 = vsub.s32 0, %v346_v9 }
  0x16   :  { %342 = vperm.xlu0 %449, %v339_v21  }
  0x85   :  { %v183_v44 = vpop.permute.xlu0 %182  ;;  %v193_v45 = vpop.permute.xlu1 %192 }
  0x89   :  { %v188_v46 = vpop.permute.xlu0 %187  ;;  %v198_v47 = vpop.permute.xlu1 %197 }
  0x8d   :  { %v309_v48 = vpop.permute.xlu0 %308  ;;  %v314_v57 = vpop.permute.xlu1 %313 }
  0x91   :  { %v319_v0 = vpop.permute.xlu0 %318  ;;  %v324_v3 = vpop.permute.xlu1 %323 }
  0x95   :  { %v343_v14 = vpop.permute.xlu0 %342 }
  0x96   :  { %v348_v16 = vrot.slane %v343_v14, %v347_v12 }
  0xd7   :  { %v392_v22 = vpop.f32.mrb[0].mxu0 }
  0xd8   :  { %v165_v23 = vmax.f32 %v392_v22, 0.0  ;;  %v125_v24 = vpop.f32.mrb[1].mxu0 }
  0xd9   :  { %v164_v25 = vmax.f32 %v125_v24, 0.0 }
  0xdb   :  { %v424_v26 = vpack.c.bf16 %v165_v23, %v164_v25  ;;  %v395_v27 = vpop.f32.mrb[2].mxu0 }
  0xdc   :  { %v167_v28 = vmax.f32 %v395_v27, 0.0  ;;  %v135_v29 = vpop.f32.mrb[3].mxu0 }
  0xdd   :  { %v166_v30 = vmax.f32 %v135_v29, 0.0  ;;  %425 = vmatprep.subr.bf16.mxu0 %v424_v26  ;;  %440 = vmatprep.subr.bf16.mxu1 %v424_v26 }
  0xde   :  { %427 = vmatpush3.bf16.msra.mxu0 %v424_v26  ;;  %444 = vmatpush3.bf16.msra.mxu1 %v424_v26 }
  0xdf   :  { %v428_v31 = vpack.c.bf16 %v167_v28, %v166_v30  ;;  %v398_v32 = vpop.f32.mrb[4].mxu0 }
  0xe0   :  { %v169_v33 = vmax.f32 %v398_v32, 0.0  ;;  %v145_v34 = vpop.f32.mrb[5].mxu0 }
  0xe1   :  { %v168_v35 = vmax.f32 %v145_v34, 0.0  ;;  %429 = vmatprep.subr.bf16.mxu0 %v428_v31  ;;  %441 = vmatprep.subr.bf16.mxu1 %v428_v31 }
  0xe2   :  { %431 = vmatpush3.bf16.msra.mxu0 %v428_v31  ;;  %445 = vmatpush3.bf16.msra.mxu1 %v428_v31 }
  0xe3   :  { %v432_v36 = vpack.c.bf16 %v169_v33, %v168_v35  ;;  %v401_v37 = vpop.f32.mrb[6].mxu0 }
  0xe4   :  { %v171_v38 = vmax.f32 %v401_v37, 0.0  ;;  %v155_v39 = vpop.f32.mrb[7].mxu0 }
  0xe5   :  { %v170_v40 = vmax.f32 %v155_v39, 0.0  ;;  %433 = vmatprep.subr.bf16.mxu0 %v432_v36  ;;  %442 = vmatprep.subr.bf16.mxu1 %v432_v36 }
  0xe6   :  { %435 = vmatpush3.bf16.msra.mxu0 %v432_v36  ;;  %446 = vmatpush3.bf16.msra.mxu1 %v432_v36 }
  0xe7   :  { %v436_v41 = vpack.c.bf16 %v171_v38, %v170_v40 }
  0xe9   :  { %437 = vmatprep.subr.bf16.mxu0 %v436_v41  ;;  %443 = vmatprep.subr.bf16.mxu1 %v436_v41 }
  0xea   :  { %439 = vmatpush3.bf16.msra.mxu0 %v436_v41  ;;  %447 = vmatpush3.bf16.msra.mxu1 %v436_v41 }
  0xed   :  { %419 = vmatmul.mubr.msk.f32.vlgmr.msra.gmra.mrb[8].mxu0 %vm200_vm1, %v173_v42  ;;  %422 = vmatmul.mubr.msk.f32.vlgmr.msra.gmra.mrb[0].mxu1 %vm200_vm1, %v175_v43 }
 0x1c0   :  { %v420_v49 = vpop.f32.mrb[8].mxu0  ;;  %v423_v50 = vpop.f32.mrb[0].mxu1 }
 0x1c1   :  { %v285_v51 = vadd.f32 %v420_v49, %v188_v46  ;;  %v279_v52 = vpop.f32.mrb[9].mxu0  ;;  %v289_v53 = vpop.f32.mrb[1].mxu1  ;;  %v295_v54 = vadd.f32 %v423_v50, %v198_v47 }
 0x1c2   :  { %v280_v55 = vadd.f32 %v279_v52, %v183_v44  ;;  %v290_v56 = vadd.f32 %v289_v53, %v193_v45 }
 0x1c3   :  { %v299_v58 = vmax.f32 %v285_v51, 0.0  ;;  %v301_v62 = vmax.f32 %v295_v54, 0.0 }
 0x1c4   :  { %v298_v59 = vmax.f32 %v280_v55, 0.0  ;;  %v300_v60 = vmax.f32 %v290_v56, 0.0 }
 0x1c5   :  { %v327_v61 = vmul.f32 %v314_v57, %v299_v58  ;;  %v329_v4 = vmul.f32 %v324_v3, %v301_v62 }
 0x1c6   :  { %v326_v63 = vmul.f32 %v309_v48, %v298_v59  ;;  %v328_v2 = vmul.f32 %v319_v0, %v300_v60 }
 0x1c8   :  { %v330_v1 = vadd.f32 %v327_v61, %v326_v63 }
 0x1ca   :  { %v331_v5 = vadd.f32 %v330_v1, %v328_v2 }
 0x1cc   :  { %v332_v7 = vadd.f32 %v331_v5, %v329_v4 }
 0x1ce   :  { %v333_v8 = vrot.slane %v332_v7, 4 }
 0x1d0   :  { %v334_v10 = vadd.f32 %v333_v8, %v332_v7 }
 0x1d2   :  { %v335_v11 = vrot.slane %v334_v10, 2 }
 0x1d4   :  { %v336_v13 = vadd.f32 %v335_v11, %v334_v10 }
 0x1d6   :  { %v337_v15 = vrot.slane %v336_v13, 1 }
 0x1d8   :  { %v338_v17 = vadd.f32 %v337_v15, %v336_v13 }
 0x1da   :  { %v349_v18 = vadd.f32 %v348_v16, %v338_v17 }
 0x1dc   :  { %350 = vst [vmem:[%s574_s6] sm:$0x1] %v349_v18 }

</bundles_post_ra>
